<compile_context>
chip_gen: v7x
topology: tpu7x:2x2x1
jax: 0.10.0
libtpu: 0.0.40
codegen_flags: <defaults>
</compile_context>

<pallas_src>
import functools
import math

import jax
import jax.numpy as jnp
from jax.experimental import pallas as pl
from jax.experimental.pallas import tpu as pltpu


_LOG_CLIP = math.log(0.005)


def _cdiv(a, b):
    return -(-a // b)


def _round_up(x, m):
    return _cdiv(x, m) * m


def _softplus(x):
    # numerically stable log(1 + exp(x))
    return jnp.maximum(x, 0.0) + jnp.log(1.0 + jnp.exp(-jnp.abs(x)))


def _sigmoid(x):
    # numerically stable logistic using only exp / where / divide
    z = jnp.exp(-jnp.abs(x))
    return jnp.where(x >= 0.0, 1.0, z) / (1.0 + z)


def _kd_loss_kernel(te_ref, st_ref, lab_ref, num_ref, den_ref,
                    num_acc, den_acc, *,
                    n_valid, temperature, loss_type, needs_mask):
    p = pl.program_id(0)          # megacore split index
    i = pl.program_id(1)          # spatial tile index within the split
    nt = pl.num_programs(1)

    @pl.when(i == 0)
    def _init():
        num_acc[...] = jnp.zeros_like(num_acc)
        den_acc[...] = jnp.zeros_like(den_acc)

    B = te_ref.shape[0]
    TSR, LANE = num_acc.shape
    inv_t = 1.0 / temperature

    # Per-pixel label histogram across the batch: collapses the reference's
    # (B, B, ...) eq-broadcast into a per-(b, pixel) match count (num_cls==2).
    labs = [lab_ref[b] for b in range(B)]              # each (TSR, LANE) int32
    cnt1 = jnp.zeros((TSR, LANE), jnp.float32)
    cnt0 = jnp.zeros((TSR, LANE), jnp.float32)
    for lb in labs:
        cnt1 = cnt1 + (lb == 1).astype(jnp.float32)
        cnt0 = cnt0 + (lb == 0).astype(jnp.float32)

    num_add = jnp.zeros((TSR, LANE), jnp.float32)
    den_add = jnp.zeros((TSR, LANE), jnp.float32)

    for b in range(B):
        # 2-class closed form: everything depends on the logit gap d = x1-x0.
        d_te = (te_ref[b, 1].astype(jnp.float32)
                - te_ref[b, 0].astype(jnp.float32))    # (TSR, LANE)
        d_st = (st_ref[b, 1].astype(jnp.float32)
                - st_ref[b, 0].astype(jnp.float32))
        lab_b = labs[b].astype(jnp.float32)

        # hard-label CE: -log_softmax(x)[label] == softplus(d) - label*d
        te_ce = _softplus(d_te) - lab_b * d_te
        st_ce = _softplus(d_st) - lab_b * d_st
        kd_mask1 = jnp.maximum(st_ce - te_ce, 0.0)

        # teacher argmax over channels (tie -> class 0, torch argmax order),
        # combined with the label histogram -> per-pixel match count.
        count = jnp.where(d_te > 0.0, cnt1, cnt0)

        # temperature-softened distributions + pixel-wise KD loss
        if loss_type == 'entropy':
            p1 = _sigmoid(d_te * inv_t)                    # teacher prob of 1
            sp = _softplus(d_st * inv_t)
            log_q0 = jnp.maximum(-sp, _LOG_CLIP)           # log softmax(st/T)[0]
            log_q1 = jnp.maximum(d_st * inv_t - sp, _LOG_CLIP)
            kd_pix = -(p1 * log_q1 + (1.0 - p1) * log_q0)
        else:  # 'mse' consistency: sum_c (p_c - q_c)^2 == 2*(p1 - q1)^2
            diff = _sigmoid(d_te * inv_t) - _sigmoid(d_st * inv_t)
            kd_pix = 2.0 * diff * diff

        w = kd_mask1 * count
        num_add = num_add + kd_pix * w
        den_add = den_add + w

    if needs_mask:
        # mask out spatial padding (only compiled in when padding exists)
        row = jax.lax.broadcasted_iota(jnp.int32, (TSR, LANE), 0)
        col = jax.lax.broadcasted_iota(jnp.int32, (TSR, LANE), 1)
        gidx = ((p * nt + i) * TSR + row) * LANE + col
        valid = (gidx < n_valid).astype(jnp.float32)
        num_add = num_add * valid
        den_add = den_add * valid

    num_acc[...] += num_add
    den_acc[...] += den_add

    @pl.when(i == nt - 1)
    def _finalize():
        num_ref[...] = jnp.sum(num_acc[...], keepdims=True).reshape(1, 1, 1)
        den_ref[...] = jnp.sum(den_acc[...], keepdims=True).reshape(1, 1, 1)


def kd_loss_forward(teacher_out, student_out, label, *,
                    temperature=5.0, loss_type='entropy', tile_rows=512):
    """Pallas implementation of kd_loss.forward. Returns a scalar (f32)."""
    B, C, D, H, W = teacher_out.shape
    assert C == 2, "kd_loss hard-codes num_cls=2"
    S = D * H * W

    # Pack the spatial axis densely as (rows, 128); tile rows in multiples of 8.
    # Auto-shrink the tile so double-buffered inputs fit the VMEM budget even
    # for larger batches (keeps headroom for scratch + compiler temporaries).
    itemsize_ts = jnp.dtype(teacher_out.dtype).itemsize
    bytes_per_row = 128 * (2 * B * C * itemsize_ts + B * 4)     # te+st+labels
    budget = 20 * 1024 * 1024                                   # double-buffered
    max_rows = max(8, (budget // (2 * bytes_per_row)) // 8 * 8)
    tile_rows = min(tile_rows, max_rows)

    SR = _cdiv(S, 128)
    k = max(1, _cdiv(SR, tile_rows))
    TSR = _round_up(_cdiv(SR, k), 8)        # <= tile_rows, multiple of 8
    SRp = _round_up(SR, TSR)
    nt_total = SRp // TSR
    if nt_total % 2 == 0:                   # megacore split (v7x: 2 TCs)
        nsplit, nt = 2, nt_total // 2
    else:
        nsplit, nt = 1, nt_total
    Sp = SRp * 128

    # Natural (B, C, S) layout: reshape is free; pad only when needed.
    te = teacher_out.reshape(B, C, S)
    st = student_out.reshape(B, C, S)
    lab = label.reshape(B, S).astype(jnp.int32)
    if Sp != S:
        pad = Sp - S
        te = jnp.pad(te, ((0, 0), (0, 0), (0, pad)))
        st = jnp.pad(st, ((0, 0), (0, 0), (0, pad)))
        lab = jnp.pad(lab, ((0, 0), (0, pad)))
    te = te.reshape(B, C, SRp, 128)
    st = st.reshape(B, C, SRp, 128)
    lab = lab.reshape(B, SRp, 128)

    kernel = functools.partial(
        _kd_loss_kernel, n_valid=S, temperature=float(temperature),
        loss_type=loss_type, needs_mask=(Sp != S))

    num, den = pl.pallas_call(
        kernel,
        out_shape=(jax.ShapeDtypeStruct((nsplit, 1, 1), jnp.float32),
                   jax.ShapeDtypeStruct((nsplit, 1, 1), jnp.float32)),
        grid_spec=pltpu.PrefetchScalarGridSpec(
            num_scalar_prefetch=0,
            grid=(nsplit, nt),
            in_specs=[
                pl.BlockSpec((B, C, TSR, 128),
                             lambda p, i: (0, 0, p * nt + i, 0)),
                pl.BlockSpec((B, C, TSR, 128),
                             lambda p, i: (0, 0, p * nt + i, 0)),
                pl.BlockSpec((B, TSR, 128),
                             lambda p, i: (0, p * nt + i, 0)),
            ],
            out_specs=[
                pl.BlockSpec((1, 1, 1), lambda p, i: (p, 0, 0)),
                pl.BlockSpec((1, 1, 1), lambda p, i: (p, 0, 0)),
            ],
            scratch_shapes=[pltpu.VMEM((TSR, 128), jnp.float32),
                            pltpu.VMEM((TSR, 128), jnp.float32)],
        ),
        compiler_params=pltpu.CompilerParams(
            dimension_semantics=("parallel", "arbitrary"),
            vmem_limit_bytes=32 * 1024 * 1024),
    )(te, st, lab)

    # TODO(synk): the torch forward divides by a possibly-zero mask sum (the
    # module's eps is unused); parity is kept, so den == 0 -> NaN.
    return (jnp.sum(num) / jnp.sum(den)).astype(jnp.float32)


def kd_loss_reference(te, st, lab, *, temperature=5.0, loss_type='entropy'):
    """Pure-JAX replica of the torch forward (including its eq broadcast)."""
    lab_sq = lab[:, 0].astype(jnp.int32)                       # (B, D, H, W)
    lsm_te = jax.nn.log_softmax(te, axis=1)
    lsm_st = jax.nn.log_softmax(st, axis=1)
    te_ce = -jnp.take_along_axis(lsm_te, lab_sq[:, None], axis=1)[:, 0]
    st_ce = -jnp.take_along_axis(lsm_st, lab_sq[:, None], axis=1)[:, 0]
    kd_mask1 = jnp.maximum(st_ce - te_ce, 0.0)                 # (B, D, H, W)
    te_pred = jnp.argmax(jax.nn.softmax(te, axis=1), axis=1)   # (B, D, H, W)
    kd_mask2 = (te_pred == lab).astype(jnp.float32)            # (B, B, D, H, W)
    kd_mask = kd_mask2 * kd_mask1                              # broadcast
    soft_te = jax.nn.softmax(te / temperature, axis=1)
    soft_st = jax.nn.softmax(st / temperature, axis=1)
    if loss_type == 'entropy':
        kd_pix = jnp.sum(-soft_te * jnp.log(jnp.clip(soft_st, 0.005, 1.0)),
                         axis=1)
    else:
        kd_pix = jnp.sum((soft_te - soft_st) ** 2, axis=1)
    return jnp.sum(kd_pix * kd_mask) / jnp.sum(kd_mask)


if __name__ == "__main__":
    key = jax.random.PRNGKey(0)
    B, C, D, H, W = 2, 2, 8, 16, 16     # num_cls=2 is hard-coded in the module
    k1, k2, k3 = jax.random.split(key, 3)
    teacher_out = jax.random.normal(k1, (B, C, D, H, W), jnp.float32)
    student_out = jax.random.normal(k2, (B, C, D, H, W), jnp.float32)
    label = jax.random.randint(k3, (B, 1, D, H, W), 0, C, dtype=jnp.int32)

    for lt in ("entropy", "mse"):
        loss = kd_loss_forward(teacher_out, student_out, label,
                               temperature=5.0, loss_type=lt)
        loss = jax.block_until_ready(loss)
        ref = kd_loss_reference(teacher_out, student_out, label,
                                temperature=5.0, loss_type=lt)
        assert jnp.isfinite(loss), (lt, loss)
        assert jnp.allclose(loss, ref, rtol=1e-4, atol=1e-5), (lt, loss, ref)

    print("KERNEL_OK")
</pallas_src>

<mosaic_0001>
module attributes {stable_mosaic.version = 11 : i64} {
  func.func @_kd_loss_kernel(%arg0: i32, %arg1: i32, %arg2: memref<2x2x16x128xf32, #tpu.memory_space<vmem>>, %arg3: memref<2x2x16x128xf32, #tpu.memory_space<vmem>>, %arg4: memref<2x16x128xi32, #tpu.memory_space<vmem>>, %arg5: memref<1x1x1xf32, #tpu.memory_space<vmem>>, %arg6: memref<1x1x1xf32, #tpu.memory_space<vmem>>, %arg7: memref<16x128xf32, #tpu.memory_space<vmem>>, %arg8: memref<16x128xf32, #tpu.memory_space<vmem>>) attributes {dimension_semantics = [#tpu.dimension_semantics<parallel>, #tpu.dimension_semantics<arbitrary>], iteration_bounds = array<i64: 1, 1>, scalar_prefetch = 0 : i64, scratch_operands = 2 : i64, tpu.core_type = #tpu.core_type<tc>, window_params = [{transform_indices = @transform_0, window_bounds = array<i64: 2, 2, 16, 128>}, {transform_indices = @transform_1, window_bounds = array<i64: 2, 2, 16, 128>}, {transform_indices = @transform_2, window_bounds = array<i64: 2, 16, 128>}, {transform_indices = @transform_3, window_bounds = array<i64: 1, 1, 1>}, {transform_indices = @transform_4, window_bounds = array<i64: 1, 1, 1>}]} {
    %c0_i32 = arith.constant 0 : i32
    %0 = arith.cmpi eq, %arg1, %c0_i32 : i32
    %1 = arith.extui %0 : i1 to i32
    %c0_i32_0 = arith.constant 0 : i32
    %2 = arith.cmpi ne, %1, %c0_i32_0 : i32
    scf.if %2 {
      %cst_99 = arith.constant 0.000000e+00 : f32
      %212 = vector.broadcast %cst_99 : f32 to vector<16x128xf32>
      %c0_100 = arith.constant 0 : index
      %c0_101 = arith.constant 0 : index
      %213 = vector.load %arg7[%c0_100, %c0_101] : memref<16x128xf32, #tpu.memory_space<vmem>>, vector<16x128xf32>
      tpu.vector_store %arg7[%c0_100, %c0_101], %212 {strides = array<i32>} : memref<16x128xf32, #tpu.memory_space<vmem>>, vector<16x128xf32>,
      %cst_102 = arith.constant 0.000000e+00 : f32
      %214 = vector.broadcast %cst_102 : f32 to vector<16x128xf32>
      %c0_103 = arith.constant 0 : index
      %c0_104 = arith.constant 0 : index
      %215 = vector.load %arg8[%c0_103, %c0_104] : memref<16x128xf32, #tpu.memory_space<vmem>>, vector<16x128xf32>
      tpu.vector_store %arg8[%c0_103, %c0_104], %214 {strides = array<i32>} : memref<16x128xf32, #tpu.memory_space<vmem>>, vector<16x128xf32>,
    } else {
    }
    %c0 = arith.constant 0 : index
    %c0_1 = arith.constant 0 : index
    %c0_2 = arith.constant 0 : index
    %3 = vector.load %arg4[%c0, %c0_1, %c0_2] : memref<2x16x128xi32, #tpu.memory_space<vmem>>, vector<1x16x128xi32>
    %4 = vector.shape_cast %3 : vector<1x16x128xi32> to vector<16x128xi32>
    %c1 = arith.constant 1 : index
    %c0_3 = arith.constant 0 : index
    %c0_4 = arith.constant 0 : index
    %5 = vector.load %arg4[%c1, %c0_3, %c0_4] : memref<2x16x128xi32, #tpu.memory_space<vmem>>, vector<1x16x128xi32>
    %6 = vector.shape_cast %5 : vector<1x16x128xi32> to vector<16x128xi32>
    %cst = arith.constant 0.000000e+00 : f32
    %7 = vector.broadcast %cst : f32 to vector<16x128xf32>
    %cst_5 = arith.constant 0.000000e+00 : f32
    %8 = vector.broadcast %cst_5 : f32 to vector<16x128xf32>
    %c1_i32 = arith.constant 1 : i32
    %9 = vector.broadcast %c1_i32 : i32 to vector<16x128xi32>
    %10 = arith.cmpi eq, %4, %9 : vector<16x128xi32>
    %11 = arith.extui %10 : vector<16x128xi1> to vector<16x128xi32>
    %12 = arith.sitofp %11 : vector<16x128xi32> to vector<16x128xf32>
    %13 = arith.addf %7, %12 : vector<16x128xf32>
    %c0_i32_6 = arith.constant 0 : i32
    %14 = vector.broadcast %c0_i32_6 : i32 to vector<16x128xi32>
    %15 = arith.cmpi eq, %4, %14 : vector<16x128xi32>
    %16 = arith.extui %15 : vector<16x128xi1> to vector<16x128xi32>
    %17 = arith.sitofp %16 : vector<16x128xi32> to vector<16x128xf32>
    %18 = arith.addf %8, %17 : vector<16x128xf32>
    %c1_i32_7 = arith.constant 1 : i32
    %19 = vector.broadcast %c1_i32_7 : i32 to vector<16x128xi32>
    %20 = arith.cmpi eq, %6, %19 : vector<16x128xi32>
    %21 = arith.extui %20 : vector<16x128xi1> to vector<16x128xi32>
    %22 = arith.sitofp %21 : vector<16x128xi32> to vector<16x128xf32>
    %23 = arith.addf %13, %22 : vector<16x128xf32>
    %c0_i32_8 = arith.constant 0 : i32
    %24 = vector.broadcast %c0_i32_8 : i32 to vector<16x128xi32>
    %25 = arith.cmpi eq, %6, %24 : vector<16x128xi32>
    %26 = arith.extui %25 : vector<16x128xi1> to vector<16x128xi32>
    %27 = arith.sitofp %26 : vector<16x128xi32> to vector<16x128xf32>
    %28 = arith.addf %18, %27 : vector<16x128xf32>
    %cst_9 = arith.constant 0.000000e+00 : f32
    %29 = vector.broadcast %cst_9 : f32 to vector<16x128xf32>
    %cst_10 = arith.constant 0.000000e+00 : f32
    %30 = vector.broadcast %cst_10 : f32 to vector<16x128xf32>
    %c0_11 = arith.constant 0 : index
    %c1_12 = arith.constant 1 : index
    %c0_13 = arith.constant 0 : index
    %c0_14 = arith.constant 0 : index
    %31 = vector.load %arg2[%c0_11, %c1_12, %c0_13, %c0_14] : memref<2x2x16x128xf32, #tpu.memory_space<vmem>>, vector<1x1x16x128xf32>
    %32 = vector.shape_cast %31 : vector<1x1x16x128xf32> to vector<16x128xf32>
    %c0_15 = arith.constant 0 : index
    %c0_16 = arith.constant 0 : index
    %c0_17 = arith.constant 0 : index
    %c0_18 = arith.constant 0 : index
    %33 = vector.load %arg2[%c0_15, %c0_16, %c0_17, %c0_18] : memref<2x2x16x128xf32, #tpu.memory_space<vmem>>, vector<1x1x16x128xf32>
    %34 = vector.shape_cast %33 : vector<1x1x16x128xf32> to vector<16x128xf32>
    %35 = arith.subf %32, %34 : vector<16x128xf32>
    %c0_19 = arith.constant 0 : index
    %c1_20 = arith.constant 1 : index
    %c0_21 = arith.constant 0 : index
    %c0_22 = arith.constant 0 : index
    %36 = vector.load %arg3[%c0_19, %c1_20, %c0_21, %c0_22] : memref<2x2x16x128xf32, #tpu.memory_space<vmem>>, vector<1x1x16x128xf32>
    %37 = vector.shape_cast %36 : vector<1x1x16x128xf32> to vector<16x128xf32>
    %c0_23 = arith.constant 0 : index
    %c0_24 = arith.constant 0 : index
    %c0_25 = arith.constant 0 : index
    %c0_26 = arith.constant 0 : index
    %38 = vector.load %arg3[%c0_23, %c0_24, %c0_25, %c0_26] : memref<2x2x16x128xf32, #tpu.memory_space<vmem>>, vector<1x1x16x128xf32>
    %39 = vector.shape_cast %38 : vector<1x1x16x128xf32> to vector<16x128xf32>
    %40 = arith.subf %37, %39 : vector<16x128xf32>
    %41 = arith.sitofp %4 : vector<16x128xi32> to vector<16x128xf32>
    %cst_27 = arith.constant 0.000000e+00 : f32
    %42 = vector.broadcast %cst_27 : f32 to vector<16x128xf32>
    %43 = arith.maximumf %35, %42 : vector<16x128xf32>
    %44 = math.absf %35 : vector<16x128xf32>
    %cst_28 = arith.constant 0.000000e+00 : f32
    %45 = vector.broadcast %cst_28 : f32 to vector<16x128xf32>
    %46 = arith.subf %45, %44 : vector<16x128xf32>
    %47 = math.exp %46 : vector<16x128xf32>
    %cst_29 = arith.constant 1.000000e+00 : f32
    %48 = vector.broadcast %cst_29 : f32 to vector<16x128xf32>
    %49 = arith.addf %48, %47 : vector<16x128xf32>
    %50 = math.log %49 : vector<16x128xf32>
    %51 = arith.addf %43, %50 : vector<16x128xf32>
    %52 = arith.mulf %41, %35 : vector<16x128xf32>
    %53 = arith.subf %51, %52 : vector<16x128xf32>
    %cst_30 = arith.constant 0.000000e+00 : f32
    %54 = vector.broadcast %cst_30 : f32 to vector<16x128xf32>
    %55 = arith.maximumf %40, %54 : vector<16x128xf32>
    %56 = math.absf %40 : vector<16x128xf32>
    %cst_31 = arith.constant 0.000000e+00 : f32
    %57 = vector.broadcast %cst_31 : f32 to vector<16x128xf32>
    %58 = arith.subf %57, %56 : vector<16x128xf32>
    %59 = math.exp %58 : vector<16x128xf32>
    %cst_32 = arith.constant 1.000000e+00 : f32
    %60 = vector.broadcast %cst_32 : f32 to vector<16x128xf32>
    %61 = arith.addf %60, %59 : vector<16x128xf32>
    %62 = math.log %61 : vector<16x128xf32>
    %63 = arith.addf %55, %62 : vector<16x128xf32>
    %64 = arith.mulf %41, %40 : vector<16x128xf32>
    %65 = arith.subf %63, %64 : vector<16x128xf32>
    %66 = arith.subf %65, %53 : vector<16x128xf32>
    %cst_33 = arith.constant 0.000000e+00 : f32
    %67 = vector.broadcast %cst_33 : f32 to vector<16x128xf32>
    %68 = arith.maximumf %66, %67 : vector<16x128xf32>
    %cst_34 = arith.constant 0.000000e+00 : f32
    %69 = vector.broadcast %cst_34 : f32 to vector<16x128xf32>
    %70 = arith.cmpf ogt, %35, %69 : vector<16x128xf32>
    %71 = arith.select %70, %23, %28 : vector<16x128xi1>, vector<16x128xf32>
    %cst_35 = arith.constant 2.000000e-01 : f32
    %72 = vector.broadcast %cst_35 : f32 to vector<16x128xf32>
    %73 = arith.mulf %35, %72 : vector<16x128xf32>
    %74 = math.absf %73 : vector<16x128xf32>
    %cst_36 = arith.constant 0.000000e+00 : f32
    %75 = vector.broadcast %cst_36 : f32 to vector<16x128xf32>
    %76 = arith.subf %75, %74 : vector<16x128xf32>
    %77 = math.exp %76 : vector<16x128xf32>
    %cst_37 = arith.constant 0.000000e+00 : f32
    %78 = vector.broadcast %cst_37 : f32 to vector<16x128xf32>
    %79 = arith.cmpf oge, %73, %78 : vector<16x128xf32>
    %cst_38 = arith.constant 1.000000e+00 : f32
    %80 = vector.broadcast %cst_38 : f32 to vector<16x128xf32>
    %81 = arith.select %79, %80, %77 : vector<16x128xi1>, vector<16x128xf32>
    %cst_39 = arith.constant 1.000000e+00 : f32
    %82 = vector.broadcast %cst_39 : f32 to vector<16x128xf32>
    %83 = arith.addf %82, %77 : vector<16x128xf32>
    %84 = arith.divf %81, %83 : vector<16x128xf32>
    %cst_40 = arith.constant 2.000000e-01 : f32
    %85 = vector.broadcast %cst_40 : f32 to vector<16x128xf32>
    %86 = arith.mulf %40, %85 : vector<16x128xf32>
    %cst_41 = arith.constant 0.000000e+00 : f32
    %87 = vector.broadcast %cst_41 : f32 to vector<16x128xf32>
    %88 = arith.maximumf %86, %87 : vector<16x128xf32>
    %89 = math.absf %86 : vector<16x128xf32>
    %cst_42 = arith.constant 0.000000e+00 : f32
    %90 = vector.broadcast %cst_42 : f32 to vector<16x128xf32>
    %91 = arith.subf %90, %89 : vector<16x128xf32>
    %92 = math.exp %91 : vector<16x128xf32>
    %cst_43 = arith.constant 1.000000e+00 : f32
    %93 = vector.broadcast %cst_43 : f32 to vector<16x128xf32>
    %94 = arith.addf %93, %92 : vector<16x128xf32>
    %95 = math.log %94 : vector<16x128xf32>
    %96 = arith.addf %88, %95 : vector<16x128xf32>
    %cst_44 = arith.constant 0.000000e+00 : f32
    %97 = vector.broadcast %cst_44 : f32 to vector<16x128xf32>
    %98 = arith.subf %97, %96 : vector<16x128xf32>
    %cst_45 = arith.constant -5.29831743 : f32
    %99 = vector.broadcast %cst_45 : f32 to vector<16x128xf32>
    %100 = arith.maximumf %98, %99 : vector<16x128xf32>
    %cst_46 = arith.constant 2.000000e-01 : f32
    %101 = vector.broadcast %cst_46 : f32 to vector<16x128xf32>
    %102 = arith.mulf %40, %101 : vector<16x128xf32>
    %103 = arith.subf %102, %96 : vector<16x128xf32>
    %cst_47 = arith.constant -5.29831743 : f32
    %104 = vector.broadcast %cst_47 : f32 to vector<16x128xf32>
    %105 = arith.maximumf %103, %104 : vector<16x128xf32>
    %106 = arith.mulf %84, %105 : vector<16x128xf32>
    %cst_48 = arith.constant 1.000000e+00 : f32
    %107 = vector.broadcast %cst_48 : f32 to vector<16x128xf32>
    %108 = arith.subf %107, %84 : vector<16x128xf32>
    %109 = arith.mulf %108, %100 : vector<16x128xf32>
    %110 = arith.addf %106, %109 : vector<16x128xf32>
    %cst_49 = arith.constant 0.000000e+00 : f32
    %111 = vector.broadcast %cst_49 : f32 to vector<16x128xf32>
    %112 = arith.subf %111, %110 : vector<16x128xf32>
    %113 = arith.mulf %68, %71 : vector<16x128xf32>
    %114 = arith.mulf %112, %113 : vector<16x128xf32>
    %115 = arith.addf %29, %114 : vector<16x128xf32>
    %116 = arith.addf %30, %113 : vector<16x128xf32>
    %c1_50 = arith.constant 1 : index
    %c1_51 = arith.constant 1 : index
    %c0_52 = arith.constant 0 : index
    %c0_53 = arith.constant 0 : index
    %117 = vector.load %arg2[%c1_50, %c1_51, %c0_52, %c0_53] : memref<2x2x16x128xf32, #tpu.memory_space<vmem>>, vector<1x1x16x128xf32>
    %118 = vector.shape_cast %117 : vector<1x1x16x128xf32> to vector<16x128xf32>
    %c1_54 = arith.constant 1 : index
    %c0_55 = arith.constant 0 : index
    %c0_56 = arith.constant 0 : index
    %c0_57 = arith.constant 0 : index
    %119 = vector.load %arg2[%c1_54, %c0_55, %c0_56, %c0_57] : memref<2x2x16x128xf32, #tpu.memory_space<vmem>>, vector<1x1x16x128xf32>
    %120 = vector.shape_cast %119 : vector<1x1x16x128xf32> to vector<16x128xf32>
    %121 = arith.subf %118, %120 : vector<16x128xf32>
    %c1_58 = arith.constant 1 : index
    %c1_59 = arith.constant 1 : index
    %c0_60 = arith.constant 0 : index
    %c0_61 = arith.constant 0 : index
    %122 = vector.load %arg3[%c1_58, %c1_59, %c0_60, %c0_61] : memref<2x2x16x128xf32, #tpu.memory_space<vmem>>, vector<1x1x16x128xf32>
    %123 = vector.shape_cast %122 : vector<1x1x16x128xf32> to vector<16x128xf32>
    %c1_62 = arith.constant 1 : index
    %c0_63 = arith.constant 0 : index
    %c0_64 = arith.constant 0 : index
    %c0_65 = arith.constant 0 : index
    %124 = vector.load %arg3[%c1_62, %c0_63, %c0_64, %c0_65] : memref<2x2x16x128xf32, #tpu.memory_space<vmem>>, vector<1x1x16x128xf32>
    %125 = vector.shape_cast %124 : vector<1x1x16x128xf32> to vector<16x128xf32>
    %126 = arith.subf %123, %125 : vector<16x128xf32>
    %127 = arith.sitofp %6 : vector<16x128xi32> to vector<16x128xf32>
    %cst_66 = arith.constant 0.000000e+00 : f32
    %128 = vector.broadcast %cst_66 : f32 to vector<16x128xf32>
    %129 = arith.maximumf %121, %128 : vector<16x128xf32>
    %130 = math.absf %121 : vector<16x128xf32>
    %cst_67 = arith.constant 0.000000e+00 : f32
    %131 = vector.broadcast %cst_67 : f32 to vector<16x128xf32>
    %132 = arith.subf %131, %130 : vector<16x128xf32>
    %133 = math.exp %132 : vector<16x128xf32>
    %cst_68 = arith.constant 1.000000e+00 : f32
    %134 = vector.broadcast %cst_68 : f32 to vector<16x128xf32>
    %135 = arith.addf %134, %133 : vector<16x128xf32>
    %136 = math.log %135 : vector<16x128xf32>
    %137 = arith.addf %129, %136 : vector<16x128xf32>
    %138 = arith.mulf %127, %121 : vector<16x128xf32>
    %139 = arith.subf %137, %138 : vector<16x128xf32>
    %cst_69 = arith.constant 0.000000e+00 : f32
    %140 = vector.broadcast %cst_69 : f32 to vector<16x128xf32>
    %141 = arith.maximumf %126, %140 : vector<16x128xf32>
    %142 = math.absf %126 : vector<16x128xf32>
    %cst_70 = arith.constant 0.000000e+00 : f32
    %143 = vector.broadcast %cst_70 : f32 to vector<16x128xf32>
    %144 = arith.subf %143, %142 : vector<16x128xf32>
    %145 = math.exp %144 : vector<16x128xf32>
    %cst_71 = arith.constant 1.000000e+00 : f32
    %146 = vector.broadcast %cst_71 : f32 to vector<16x128xf32>
    %147 = arith.addf %146, %145 : vector<16x128xf32>
    %148 = math.log %147 : vector<16x128xf32>
    %149 = arith.addf %141, %148 : vector<16x128xf32>
    %150 = arith.mulf %127, %126 : vector<16x128xf32>
    %151 = arith.subf %149, %150 : vector<16x128xf32>
    %152 = arith.subf %151, %139 : vector<16x128xf32>
    %cst_72 = arith.constant 0.000000e+00 : f32
    %153 = vector.broadcast %cst_72 : f32 to vector<16x128xf32>
    %154 = arith.maximumf %152, %153 : vector<16x128xf32>
    %cst_73 = arith.constant 0.000000e+00 : f32
    %155 = vector.broadcast %cst_73 : f32 to vector<16x128xf32>
    %156 = arith.cmpf ogt, %121, %155 : vector<16x128xf32>
    %157 = arith.select %156, %23, %28 : vector<16x128xi1>, vector<16x128xf32>
    %cst_74 = arith.constant 2.000000e-01 : f32
    %158 = vector.broadcast %cst_74 : f32 to vector<16x128xf32>
    %159 = arith.mulf %121, %158 : vector<16x128xf32>
    %160 = math.absf %159 : vector<16x128xf32>
    %cst_75 = arith.constant 0.000000e+00 : f32
    %161 = vector.broadcast %cst_75 : f32 to vector<16x128xf32>
    %162 = arith.subf %161, %160 : vector<16x128xf32>
    %163 = math.exp %162 : vector<16x128xf32>
    %cst_76 = arith.constant 0.000000e+00 : f32
    %164 = vector.broadcast %cst_76 : f32 to vector<16x128xf32>
    %165 = arith.cmpf oge, %159, %164 : vector<16x128xf32>
    %cst_77 = arith.constant 1.000000e+00 : f32
    %166 = vector.broadcast %cst_77 : f32 to vector<16x128xf32>
    %167 = arith.select %165, %166, %163 : vector<16x128xi1>, vector<16x128xf32>
    %cst_78 = arith.constant 1.000000e+00 : f32
    %168 = vector.broadcast %cst_78 : f32 to vector<16x128xf32>
    %169 = arith.addf %168, %163 : vector<16x128xf32>
    %170 = arith.divf %167, %169 : vector<16x128xf32>
    %cst_79 = arith.constant 2.000000e-01 : f32
    %171 = vector.broadcast %cst_79 : f32 to vector<16x128xf32>
    %172 = arith.mulf %126, %171 : vector<16x128xf32>
    %cst_80 = arith.constant 0.000000e+00 : f32
    %173 = vector.broadcast %cst_80 : f32 to vector<16x128xf32>
    %174 = arith.maximumf %172, %173 : vector<16x128xf32>
    %175 = math.absf %172 : vector<16x128xf32>
    %cst_81 = arith.constant 0.000000e+00 : f32
    %176 = vector.broadcast %cst_81 : f32 to vector<16x128xf32>
    %177 = arith.subf %176, %175 : vector<16x128xf32>
    %178 = math.exp %177 : vector<16x128xf32>
    %cst_82 = arith.constant 1.000000e+00 : f32
    %179 = vector.broadcast %cst_82 : f32 to vector<16x128xf32>
    %180 = arith.addf %179, %178 : vector<16x128xf32>
    %181 = math.log %180 : vector<16x128xf32>
    %182 = arith.addf %174, %181 : vector<16x128xf32>
    %cst_83 = arith.constant 0.000000e+00 : f32
    %183 = vector.broadcast %cst_83 : f32 to vector<16x128xf32>
    %184 = arith.subf %183, %182 : vector<16x128xf32>
    %cst_84 = arith.constant -5.29831743 : f32
    %185 = vector.broadcast %cst_84 : f32 to vector<16x128xf32>
    %186 = arith.maximumf %184, %185 : vector<16x128xf32>
    %cst_85 = arith.constant 2.000000e-01 : f32
    %187 = vector.broadcast %cst_85 : f32 to vector<16x128xf32>
    %188 = arith.mulf %126, %187 : vector<16x128xf32>
    %189 = arith.subf %188, %182 : vector<16x128xf32>
    %cst_86 = arith.constant -5.29831743 : f32
    %190 = vector.broadcast %cst_86 : f32 to vector<16x128xf32>
    %191 = arith.maximumf %189, %190 : vector<16x128xf32>
    %192 = arith.mulf %170, %191 : vector<16x128xf32>
    %cst_87 = arith.constant 1.000000e+00 : f32
    %193 = vector.broadcast %cst_87 : f32 to vector<16x128xf32>
    %194 = arith.subf %193, %170 : vector<16x128xf32>
    %195 = arith.mulf %194, %186 : vector<16x128xf32>
    %196 = arith.addf %192, %195 : vector<16x128xf32>
    %cst_88 = arith.constant 0.000000e+00 : f32
    %197 = vector.broadcast %cst_88 : f32 to vector<16x128xf32>
    %198 = arith.subf %197, %196 : vector<16x128xf32>
    %199 = arith.mulf %154, %157 : vector<16x128xf32>
    %200 = arith.mulf %198, %199 : vector<16x128xf32>
    %201 = arith.addf %115, %200 : vector<16x128xf32>
    %202 = arith.addf %116, %199 : vector<16x128xf32>
    %c0_89 = arith.constant 0 : index
    %c0_90 = arith.constant 0 : index
    %203 = vector.load %arg7[%c0_89, %c0_90] : memref<16x128xf32, #tpu.memory_space<vmem>>, vector<16x128xf32>
    %204 = arith.addf %203, %201 : vector<16x128xf32>
    %c0_91 = arith.constant 0 : index
    %c0_92 = arith.constant 0 : index
    %205 = vector.load %arg7[%c0_91, %c0_92] : memref<16x128xf32, #tpu.memory_space<vmem>>, vector<16x128xf32>
    tpu.vector_store %arg7[%c0_91, %c0_92], %204 {strides = array<i32>} : memref<16x128xf32, #tpu.memory_space<vmem>>, vector<16x128xf32>,
    %c0_93 = arith.constant 0 : index
    %c0_94 = arith.constant 0 : index
    %206 = vector.load %arg8[%c0_93, %c0_94] : memref<16x128xf32, #tpu.memory_space<vmem>>, vector<16x128xf32>
    %207 = arith.addf %206, %202 : vector<16x128xf32>
    %c0_95 = arith.constant 0 : index
    %c0_96 = arith.constant 0 : index
    %208 = vector.load %arg8[%c0_95, %c0_96] : memref<16x128xf32, #tpu.memory_space<vmem>>, vector<16x128xf32>
    tpu.vector_store %arg8[%c0_95, %c0_96], %207 {strides = array<i32>} : memref<16x128xf32, #tpu.memory_space<vmem>>, vector<16x128xf32>,
    %c0_i32_97 = arith.constant 0 : i32
    %209 = arith.cmpi eq, %arg1, %c0_i32_97 : i32
    %210 = arith.extui %209 : i1 to i32
    %c0_i32_98 = arith.constant 0 : i32
    %211 = arith.cmpi ne, %210, %c0_i32_98 : i32
    scf.if %211 {
      %c0_99 = arith.constant 0 : index
      %c0_100 = arith.constant 0 : index
      %212 = vector.load %arg7[%c0_99, %c0_100] : memref<16x128xf32, #tpu.memory_space<vmem>>, vector<16x128xf32>
      %213 = vector.shape_cast %212 : vector<16x128xf32> to vector<1x16x128xf32>
      %cst_101 = arith.constant dense<0.000000e+00> : vector<1xf32>
      %214 = vector.multi_reduction <add>, %213, %cst_101 [1, 2] : vector<1x16x128xf32> to vector<1xf32>
      %215 = vector.shape_cast %214 : vector<1xf32> to vector<1x1x1xf32>
      %216 = vector.extract %215[0, 0, 0] : f32 from vector<1x1x1xf32>
      %217 = vector.broadcast %216 : f32 to vector<1x1xf32>
      %218 = vector.shape_cast %217 : vector<1x1xf32> to vector<1x1x1xf32>
      %c0_102 = arith.constant 0 : index
      %c0_103 = arith.constant 0 : index
      %c0_104 = arith.constant 0 : index
      %219 = vector.load %arg5[%c0_102, %c0_103, %c0_104] : memref<1x1x1xf32, #tpu.memory_space<vmem>>, vector<1x1x1xf32>
      tpu.vector_store %arg5[%c0_102, %c0_103, %c0_104], %218 {strides = array<i32>} : memref<1x1x1xf32, #tpu.memory_space<vmem>>, vector<1x1x1xf32>,
      %c0_105 = arith.constant 0 : index
      %c0_106 = arith.constant 0 : index
      %220 = vector.load %arg8[%c0_105, %c0_106] : memref<16x128xf32, #tpu.memory_space<vmem>>, vector<16x128xf32>
      %221 = vector.shape_cast %220 : vector<16x128xf32> to vector<1x16x128xf32>
      %cst_107 = arith.constant dense<0.000000e+00> : vector<1xf32>
      %222 = vector.multi_reduction <add>, %221, %cst_107 [1, 2] : vector<1x16x128xf32> to vector<1xf32>
      %223 = vector.shape_cast %222 : vector<1xf32> to vector<1x1x1xf32>
      %224 = vector.extract %223[0, 0, 0] : f32 from vector<1x1x1xf32>
      %225 = vector.broadcast %224 : f32 to vector<1x1xf32>
      %226 = vector.shape_cast %225 : vector<1x1xf32> to vector<1x1x1xf32>
      %c0_108 = arith.constant 0 : index
      %c0_109 = arith.constant 0 : index
      %c0_110 = arith.constant 0 : index
      %227 = vector.load %arg6[%c0_108, %c0_109, %c0_110] : memref<1x1x1xf32, #tpu.memory_space<vmem>>, vector<1x1x1xf32>
      tpu.vector_store %arg6[%c0_108, %c0_109, %c0_110], %226 {strides = array<i32>} : memref<1x1x1xf32, #tpu.memory_space<vmem>>, vector<1x1x1xf32>,
    } else {
    }
    return
  }
  func.func @transform_0(%arg0: i32, %arg1: i32) -> (i32, i32, i32, i32) {
    %c1_i32 = arith.constant 1 : i32
    %0 = arith.muli %arg0, %c1_i32 : i32
    %1 = arith.addi %0, %arg1 : i32
    %c0_i32 = arith.constant 0 : i32
    %c0_i32_0 = arith.constant 0 : i32
    %c0_i32_1 = arith.constant 0 : i32
    %c0_i32_2 = arith.constant 0 : i32
    return %c0_i32, %c0_i32_0, %1, %c0_i32_1 : i32, i32, i32, i32
  }
  func.func @transform_1(%arg0: i32, %arg1: i32) -> (i32, i32, i32, i32) {
    %c1_i32 = arith.constant 1 : i32
    %0 = arith.muli %arg0, %c1_i32 : i32
    %1 = arith.addi %0, %arg1 : i32
    %c0_i32 = arith.constant 0 : i32
    %c0_i32_0 = arith.constant 0 : i32
    %c0_i32_1 = arith.constant 0 : i32
    %c0_i32_2 = arith.constant 0 : i32
    return %c0_i32, %c0_i32_0, %1, %c0_i32_1 : i32, i32, i32, i32
  }
  func.func @transform_2(%arg0: i32, %arg1: i32) -> (i32, i32, i32) {
    %c1_i32 = arith.constant 1 : i32
    %0 = arith.muli %arg0, %c1_i32 : i32
    %1 = arith.addi %0, %arg1 : i32
    %c0_i32 = arith.constant 0 : i32
    %c0_i32_0 = arith.constant 0 : i32
    %c0_i32_1 = arith.constant 0 : i32
    return %c0_i32, %1, %c0_i32_0 : i32, i32, i32
  }
  func.func @transform_3(%arg0: i32, %arg1: i32) -> (i32, i32, i32) {
    %c0_i32 = arith.constant 0 : i32
    %c0_i32_0 = arith.constant 0 : i32
    %c0_i32_1 = arith.constant 0 : i32
    return %arg0, %c0_i32, %c0_i32_0 : i32, i32, i32
  }
  func.func @transform_4(%arg0: i32, %arg1: i32) -> (i32, i32, i32) {
    %c0_i32 = arith.constant 0 : i32
    %c0_i32_0 = arith.constant 0 : i32
    %c0_i32_1 = arith.constant 0 : i32
    return %arg0, %c0_i32, %c0_i32_0 : i32, i32, i32
  }
}

</mosaic_0001>

<bundles_post_ra>
// kernel: tpu_custom_call.1
= control target key start
LH: loop header
LB: loop body
LE: loop exit
PB: predicated region body
PF: predicated region fallthrough
CT: control target
= control target key end

     0   :  { %10 = vsyncpa [#allocation5], 0  ;;  %s988_s0 = inlined_call_operand.hbm [shape: f32[2,2,16,128], index: 0, kind: input, shape index: {}]   ;;  %s989_s1 = inlined_call_operand.hbm [shape: f32[2,2,16,128], index: 1, kind: input, shape index: {}]   ;;  %s990_s2 = inlined_call_operand.hbm [shape: s32[2,16,128], index: 2, kind: input, shape index: {}]   ;;  %s991_s3 = inlined_call_operand.hbm [shape: f32[1,1,1], index: 3, kind: output, shape index: {0}]   ;;  %s992_s4 = inlined_call_operand.hbm [shape: f32[1,1,1], index: 4, kind: output, shape index: {1}]  }
   0x1   :  { %11 = vsyncpa [#allocation8], 0 }
   0x2   :  { %12 = vsyncpa [#allocation6], 0 }
   0x3   :  { %13 = vsyncpa [#allocation12], 0  ;;  %s668_s15 = smov [#allocation7]   ;;  %s669_s17 = smov [#allocation4]  }
   0x4   :  { %s39_s16 = sshll.u32 %s668_s15, 4  ;;  %s23_s18 = sshll.u32 %s669_s17, 4  ;;  %s40_s16 = int_to_ptr.vmem [resolvable:$true] %s39_s16  ;;  %s701_s18 = int_to_ptr.vmem [resolvable:$true] %s23_s18 }
   0x5   :  { %s550_s21 = scalar_lea.hbm %s989_s1, 1024 }
   0x6   :  { %p551_p0 = scmp.ne.s32.totalorder %s989_s1, %s550_s21  ;;  %p554_p1 = scmp.lt.u32.totalorder %s550_s21, %s989_s1 }
   0x8   :  { %p556_p2 = pnand %p554_p1, %p551_p0 }
   0xa   :  { %559 = shalt.err (!%p556_p2)
}
   0xb   :  { %s560_s26 = scalar_lea.vmem %s40_s16, 1024  ;;  %p565_p4 = scmp.lt.s32.totalorder %s40_s16, %s40_s16 }
   0xc   :  { %p561_p3 = scmp.ne.s32.totalorder %s40_s16, %s560_s26  ;;  %p566_p5 = scmp.lt.s32.totalorder %s560_s26, %s560_s26 }
   0xe   :  { %p567_p6 = por %p566_p5, %p565_p4 }
  0x10   :  { %p568_p7 = pnand %p567_p6, %p561_p3 }
  0x12   :  { %571 = shalt.err (!%p568_p7)
}
  0x13   :  { %s670_s27 = smov 128   ;;  %s671_s28 = smov 8  }
  0x14   :  { %45 = dma.hbm_to_vmem [thread:$0]  %s989_s1, 1024, %s40_s16, [#allocation8], %s670_s27, %s670_s27, %s671_s28  }
  0x15   :  { %s572_s7 = scalar_lea.hbm %s988_s0, 1024 }
  0x16   :  { %p573_p8 = scmp.ne.s32.totalorder %s988_s0, %s572_s7  ;;  %p576_p9 = scmp.lt.u32.totalorder %s572_s7, %s988_s0 }
  0x18   :  { %p578_p10 = pnand %p576_p9, %p573_p8 }
  0x1a   :  { %581 = shalt.err (!%p578_p10)
}
  0x1b   :  { %s582_s12 = scalar_lea.vmem %s701_s18, 1024  ;;  %p587_p12 = scmp.lt.s32.totalorder %s701_s18, %s701_s18 }
  0x1c   :  { %p583_p11 = scmp.ne.s32.totalorder %s701_s18, %s582_s12  ;;  %p588_p13 = scmp.lt.s32.totalorder %s582_s12, %s582_s12 }
  0x1e   :  { %p589_p0 = por %p588_p13, %p587_p12 }
  0x20   :  { %p590_p1 = pnand %p589_p0, %p583_p11 }
  0x22   :  { %593 = shalt.err (!%p590_p1)
}
  0x23   :  { %29 = dma.hbm_to_vmem [thread:$0]  %s988_s0, 1024, %s701_s18, [#allocation5], %s670_s27, %s670_s27, %s671_s28  }
  0x24   :  { %s672_s14 = smov [#allocation9]   ;;  %s594_s19 = scalar_lea.hbm %s990_s2, 512 }
  0x25   :  { %s55_s15 = sshll.u32 %s672_s14, 4  ;;  %p595_p2 = scmp.ne.s32.totalorder %s990_s2, %s594_s19  ;;  %s56_s15 = int_to_ptr.vmem [resolvable:$true] %s55_s15 }
  0x26   :  { %p598_p3 = scmp.lt.u32.totalorder %s594_s19, %s990_s2 }
  0x28   :  { %p600_p4 = pnand %p598_p3, %p595_p2 }
  0x2a   :  { %603 = shalt.err (!%p600_p4)
}
  0x2b   :  { %s604_s24 = scalar_lea.vmem %s56_s15, 512  ;;  %p609_p6 = scmp.lt.s32.totalorder %s56_s15, %s56_s15 }
  0x2c   :  { %p605_p5 = scmp.ne.s32.totalorder %s56_s15, %s604_s24  ;;  %p610_p7 = scmp.lt.s32.totalorder %s604_s24, %s604_s24 }
  0x2e   :  { %p611_p8 = por %p610_p7, %p609_p6 }
  0x30   :  { %p612_p9 = pnand %p611_p8, %p605_p5 }
  0x32   :  { %615 = shalt.err (!%p612_p9)
}
  0x33   :  { %61 = dma.hbm_to_vmem [thread:$0]  %s990_s2, 512, %s56_s15, [#allocation8], %s670_s27, %s670_s27, %s671_s28  }
  0x34   :  { %660 = dma.done.wait [#allocation5], 1024  }
  0x35   :  { %661 = vsyncadd [#allocation5], 4294966272 }
  0x36   :  { %662 = dma.done.wait [#allocation8], 1536  }
  0x37   :  { %663 = vsyncadd [#allocation8], 4294965760  ;;  %v123_v0 = vld [vmem:[#allocation4 + $0x10] sm:$0xff]  ;;  %v124_v1 = vld [vmem:[#allocation4 + $0x18] sm:$0xff]  ;;  %s674_s2 = smov [#allocation10]   ;;  %s675_s27 = smov [#allocation11]  }
  0x38   :  { %v125_v2 = vld [vmem:[#allocation4] sm:$0xff]  ;;  %v126_v3 = vld [vmem:[#allocation4 + $0x8] sm:$0xff]  ;;  %v130_v4 = vld [vmem:[#allocation7 + $0x10] sm:$0xff]  ;;  %s442_s25 = sshll.u32 %s674_s2, 4  ;;  %s452_s28 = sshll.u32 %s675_s27, 4  ;;  %s443_s25 = int_to_ptr.vmem [resolvable:$true] %s442_s25  ;;  %s453_s28 = int_to_ptr.vmem [resolvable:$true] %s452_s28 }
  0x39   :  { %v131_v5 = vld [vmem:[#allocation7 + $0x18] sm:$0xff]  ;;  %v132_v6 = vld [vmem:[#allocation7] sm:$0xff]  ;;  %v133_v7 = vld [vmem:[#allocation7 + $0x8] sm:$0xff]  ;;  %v753_v8 = vsub.f32 %v123_v0, %v125_v2  ;;  %v755_v9 = vsub.f32 %v124_v1, %v126_v3  ;;  %s616_s29 = scalar_lea.vmem %s443_s25, 16  ;;  %s620_s30 = scalar_lea.vmem %s443_s25, 32 }
  0x3a   :  { %v757_v10 = vsub.f32 %v130_v4, %v132_v6  ;;  %v759_v11 = vsub.f32 %v131_v5, %v133_v7  ;;  %v257_v18 = vld [vmem:[#allocation4 + $0x30] sm:$0xff]  ;;  %v258_v19 = vld [vmem:[#allocation4 + $0x38] sm:$0xff]  ;;  %v260_v26 = vld [vmem:[#allocation4 + $0x20] sm:$0xff]  ;;  %v673_v5 = vmov 0.0   ;;  %p617_p10 = scmp.ne.s32.totalorder %s443_s25, %s616_s29  ;;  %p621_p11 = scmp.lt.s32.totalorder %s443_s25, %s443_s25 }
  0x3b   :  { %v140_v12 = vand.u32 2147483647, %v753_v8  ;;  %v141_v13 = vand.u32 2147483647, %v755_v9  ;;  %v766_v24 = vmul.f32 0.2, %v753_v8  ;;  %v779_v34 = vsub.f32 %v257_v18, %v260_v26  ;;  %p622_p12 = scmp.lt.s32.totalorder %s620_s30, %s616_s29 }
  0x3c   :  { %v162_v16 = vand.u32 2147483647, %v757_v10  ;;  %v163_v17 = vand.u32 2147483647, %v759_v11  ;;  %v769_v25 = vmul.f32 0.2, %v755_v9 }
  0x3d   :  { %v142_v14 = vsub.f32 0.0, %v140_v12  ;;  %v143_v15 = vsub.f32 0.0, %v141_v13  ;;  %v261_v27 = vld [vmem:[#allocation4 + $0x28] sm:$0xff]  ;;  %v772_v30 = vmul.f32 0.2, %v757_v10  ;;  %v265_v40 = vld [vmem:[#allocation7 + $0x30] sm:$0xff]  ;;  %p623_p13 = por %p622_p12, %p621_p11 }
  0x3e   :  { %v164_v22 = vsub.f32 0.0, %v162_v16  ;;  %v165_v23 = vsub.f32 0.0, %v163_v17  ;;  %v192_v31 = vand.u32 2147483647, %v766_v24  ;;  %v193_v32 = vand.u32 2147483647, %v769_v25 }
  0x3f   :  { %v144_v20 = vmul.f32 1.442695, %v142_v14  ;;  %v146_v21 = vmul.f32 1.442695, %v143_v15  ;;  %v777_v33 = vmul.f32 0.2, %v759_v11  ;;  %v781_v35 = vsub.f32 %v258_v19, %v261_v27  ;;  %p624_p0 = pnand %p623_p13, %p617_p10 }
  0x40   :  { %v166_v28 = vmul.f32 1.442695, %v164_v22  ;;  %v168_v29 = vmul.f32 1.442695, %v165_v23  ;;  %v194_v36 = vsub.f32 0.0, %v192_v31  ;;  %v195_v37 = vsub.f32 0.0, %v193_v32 }
  0x41   :  { %486 = vpow2.f32 %v144_v20  ;;  %v214_v38 = vand.u32 2147483647, %v772_v30  ;;  %v215_v39 = vand.u32 2147483647, %v777_v33  ;;  %v268_v44 = vld [vmem:[#allocation7 + $0x20] sm:$0xff]  ;;  %v266_v46 = vld [vmem:[#allocation7 + $0x38] sm:$0xff] }
  0x42   :  { %488 = vpow2.f32 %v146_v21  ;;  %v196_v41 = vmul.f32 1.442695, %v194_v36  ;;  %v198_v42 = vmul.f32 1.442695, %v195_v37  ;;  %v269_v47 = vld [vmem:[#allocation7 + $0x28] sm:$0xff]  ;;  %v787_v52 = vsub.f32 %v265_v40, %v268_v44  ;;  %v789_v55 = vld [vmem:[#allocation9] sm:$0xff] }
  0x43   :  { %490 = vpow2.f32 %v166_v28  ;;  %v216_v43 = vsub.f32 0.0, %v214_v38  ;;  %v217_v45 = vsub.f32 0.0, %v215_v39  ;;  %v276_v49 = vand.u32 2147483647, %v779_v34  ;;  %v794_v60 = vld [vmem:[#allocation9 + $0x8] sm:$0xff]  ;;  %v804_v15 = vld [vmem:[#allocation9 + $0x10] sm:$0xff] }
  0x44   :  { %492 = vpow2.f32 %v168_v29  ;;  %v277_v50 = vand.u32 2147483647, %v781_v35  ;;  %v791_v56 = vsub.f32 %v266_v46, %v269_v47  ;;  %v298_v58 = vand.u32 2147483647, %v787_v52  ;;  %v806_v16 = vld [vmem:[#allocation9 + $0x18] sm:$0xff] }
  0x45   :  { %494 = vpow2.f32 %v196_v41  ;;  %v218_v48 = vmul.f32 1.442695, %v216_v43  ;;  %v220_v51 = vmul.f32 1.442695, %v217_v45  ;;  %v278_v53 = vsub.f32 0.0, %v276_v49 }
  0x46   :  { %496 = vpow2.f32 %v198_v42  ;;  %v279_v57 = vsub.f32 0.0, %v277_v50  ;;  %vm90_vm0 = vcmp.eq.s32.totalorder %v789_v55, 1  ;;  %vm91_vm1 = vcmp.eq.s32.totalorder %v794_v60, 1 }
  0x47   :  { %498 = vpow2.f32 %v218_v48  ;;  %v299_v0 = vand.u32 2147483647, %v791_v56  ;;  %v300_v1 = vsub.f32 0.0, %v298_v58  ;;  %vm98_vm2 = vcmp.eq.s32.totalorder %v789_v55, 0 }
  0x48   :  { %500 = vpow2.f32 %v220_v51  ;;  %v280_v4 = vmul.f32 1.442695, %v278_v53  ;;  %v466_v6 = vsel %vm90_vm0, 1.0, %v673_v5  ;;  %vm99_vm3 = vcmp.eq.s32.totalorder %v794_v60, 0 }
  0x49   :  { %v282_v7 = vmul.f32 1.442695, %v279_v57  ;;  %v467_v12 = vsel %vm91_vm1, 1.0, %v673_v5  ;;  %v302_v13 = vmul.f32 1.442695, %v300_v1  ;;  %v301_v18 = vsub.f32 0.0, %v299_v0 }
  0x4a   :  { %v802_v14 = vmul.f32 0.2, %v779_v34  ;;  %v809_v19 = vmul.f32 0.2, %v781_v35  ;;  %vm106_vm4 = vcmp.eq.s32.totalorder %v804_v15, 1  ;;  %vm107_vm5 = vcmp.eq.s32.totalorder %v806_v16, 1 }
  0x4b   :  { %v487_v54 = vpop.eup %486  ;;  %v821_v27 = vmul.f32 0.2, %v787_v52  ;;  %vm114_vm6 = vcmp.eq.s32.totalorder %v804_v15, 0  ;;  %v825_v31 = vmul.f32 0.2, %v791_v56  ;;  %vm115_vm7 = vcmp.eq.s32.totalorder %v806_v16, 0 }
  0x4c   :  { %v489_v59 = vpop.eup %488  ;;  %v148_v61 = vadd.f32 1.0, %v487_v54  ;;  %v328_v21 = vand.u32 2147483647, %v802_v14  ;;  %v329_v26 = vand.u32 2147483647, %v809_v19  ;;  %v470_v41 = vsel %vm106_vm4, 1.0, %v673_v5 }
  0x4d   :  { %v491_v62 = vpop.eup %490  ;;  %v149_v63 = vadd.f32 1.0, %v489_v59  ;;  %v304_v37 = vmul.f32 1.442695, %v301_v18  ;;  %v350_v43 = vand.u32 2147483647, %v821_v27  ;;  %v471_v44 = vsel %vm107_vm5, 1.0, %v673_v5 }
  0x4e   :  { %v493_v2 = vpop.eup %492  ;;  %v170_v3 = vadd.f32 1.0, %v491_v62  ;;  %502 = vlog2.f32 %v148_v61  ;;  %v330_v29 = vsub.f32 0.0, %v328_v21  ;;  %v331_v38 = vsub.f32 0.0, %v329_v26 }
  0x4f   :  { %504 = vlog2.f32 %v149_v63  ;;  %v171_v17 = vadd.f32 1.0, %v493_v2  ;;  %v811_v20 = vpop.eup %494  ;;  %v351_v46 = vand.u32 2147483647, %v825_v31  ;;  %v468_v48 = vsel %vm98_vm2, 1.0, %v673_v5 }
  0x50   :  { %506 = vlog2.f32 %v170_v3  ;;  %v816_v22 = vpop.eup %496  ;;  %v204_v23 = vadd.f32 1.0, %v811_v20  ;;  %v332_v40 = vmul.f32 1.442695, %v330_v29  ;;  %v334_v42 = vmul.f32 1.442695, %v331_v38 }
  0x51   :  { %508 = vpow2.f32 %v280_v4  ;;  %v499_v28 = vpop.eup %498  ;;  %v205_v45 = vadd.f32 1.0, %v816_v22  ;;  %v469_v49 = vsel %vm99_vm3, 1.0, %v673_v5  ;;  %v352_v50 = vsub.f32 0.0, %v350_v43 }
  0x52   :  { %510 = vpow2.f32 %v282_v7  ;;  %v501_v32 = vpop.eup %500  ;;  %v222_v36 = vadd.f32 1.0, %v499_v28  ;;  %v472_v53 = vsel %vm114_vm6, 1.0, %v673_v5  ;;  %v473_v54 = vsel %vm115_vm7, 1.0, %v673_v5 }
  0x53   :  { %512 = vpow2.f32 %v302_v13  ;;  %v223_v39 = vadd.f32 1.0, %v501_v32  ;;  %v353_v57 = vsub.f32 0.0, %v351_v46  ;;  %v847_v59 = vadd.f32 %v470_v41, %v466_v6 }
  0x54   :  { %514 = vlog2.f32 %v171_v17  ;;  %v849_v61 = vadd.f32 %v471_v44, %v467_v12  ;;  %v354_v62 = vmul.f32 1.442695, %v352_v50  ;;  %v136_v0 = vcvt.s32.f32 %v789_v55 }
  0x55   :  { %516 = vrcp.f32 %v204_v23  ;;  %v137_v1 = vcvt.s32.f32 %v794_v60  ;;  %v356_v2 = vmul.f32 1.442695, %v353_v57  ;;  %v853_v4 = vadd.f32 %v472_v53, %v468_v48 }
  0x56   :  { %518 = vlog2.f32 %v222_v36  ;;  %v855_v5 = vadd.f32 %v473_v54, %v469_v49  ;;  %v138_v12 = vmax.f32 %v753_v8, 0.0  ;;  %v139_v13 = vmax.f32 %v755_v9, 0.0 }
  0x57   :  { %520 = vlog2.f32 %v223_v39  ;;  %vm186_vm8 = vcmp.gt.f32.partialorder %v753_v8, 0.0  ;;  %vm187_vm9 = vcmp.gt.f32.partialorder %v755_v9, 0.0  ;;  %v864_v21 = vmul.f32 %v136_v0, %v753_v8 }
  0x58   :  { %v835_v47 = vpop.eup %502  ;;  %522 = vpow2.f32 %v304_v37  ;;  %v867_v23 = vmul.f32 %v137_v1, %v755_v9  ;;  %v160_v26 = vmax.f32 %v757_v10, 0.0  ;;  %v161_v29 = vmax.f32 %v759_v11, 0.0 }
  0x59   :  { %v841_v51 = vpop.eup %504  ;;  %524 = vpow2.f32 %v332_v40  ;;  %v272_v32 = vcvt.s32.f32 %v804_v15  ;;  %v273_v36 = vcvt.s32.f32 %v806_v16  ;;  %v874_v38 = vmul.f32 %v136_v0, %v757_v10 }
  0x5a   :  { %v507_v58 = vpop.eup %506  ;;  %526 = vpow2.f32 %v334_v42  ;;  %v877_v39 = vmul.f32 %v137_v1, %v759_v11  ;;  %v883_v40 = vsel %vm186_vm8, %v847_v59, %v853_v4  ;;  %v889_v15 = vsel %vm187_vm9, %v849_v61, %v855_v5 }
  0x5b   :  { %v509_v63 = vpop.eup %508  ;;  %528 = vrcp.f32 %v205_v45  ;;  %vm200_vm10 = vcmp.ge.f32.partialorder %v766_v24, 0.0  ;;  %vm201_vm11 = vcmp.ge.f32.partialorder %v769_v25, 0.0  ;;  %v212_v10 = vmax.f32 %v772_v30, 0.0 }
  0x5c   :  { %v511_v3 = vpop.eup %510  ;;  %v284_v7 = vadd.f32 1.0, %v509_v63  ;;  %530 = vpow2.f32 %v354_v62  ;;  %v213_v11 = vmax.f32 %v777_v33, 0.0  ;;  %v274_v42 = vmax.f32 %v779_v34, 0.0 }
  0x5d   :  { %v513_v6 = vpop.eup %512  ;;  %v285_v17 = vadd.f32 1.0, %v511_v3  ;;  %532 = vpow2.f32 %v356_v2  ;;  %v275_v43 = vmax.f32 %v781_v35, 0.0  ;;  %v902_v46 = vmul.f32 %v272_v32, %v779_v34 }
  0x5e   :  { %v515_v18 = vpop.eup %514  ;;  %534 = vlog2.f32 %v284_v7  ;;  %v306_v55 = vadd.f32 1.0, %v513_v6  ;;  %v905_v48 = vmul.f32 %v273_v36, %v781_v35  ;;  %v296_v49 = vmax.f32 %v787_v52, 0.0 }
  0x5f   :  { %v861_v60 = vpop.eup %516  ;;  %536 = vlog2.f32 %v285_v17  ;;  %v151_v54 = vmul.f32 0.6931472, %v835_v47  ;;  %v297_v62 = vmax.f32 %v791_v56, 0.0  ;;  %v153_v0 = vmul.f32 0.6931472, %v841_v51 }
  0x60   :  { %v519_v28 = vpop.eup %518  ;;  %538 = vlog2.f32 %v306_v55  ;;  %v173_v1 = vmul.f32 0.6931472, %v507_v58  ;;  %v913_v2 = vmul.f32 %v272_v32, %v787_v52  ;;  %v175_v6 = vmul.f32 0.6931472, %v515_v18 }
  0x61   :  { %v521_v37 = vpop.eup %520  ;;  %v225_v8 = vmul.f32 0.6931472, %v519_v28  ;;  %v202_v47 = vsel %vm200_vm10, 1.0, %v811_v20  ;;  %v154_v52 = vadd.f32 %v151_v54, %v138_v12  ;;  %v203_v32 = vsel %vm201_vm11, 1.0, %v816_v22 }
  0x62   :  { %v523_v16 = vpop.eup %522  ;;  %v227_v57 = vmul.f32 0.6931472, %v521_v37  ;;  %v920_v37 = vmul.f32 %v273_v36, %v791_v56  ;;  %v177_v20 = vadd.f32 %v175_v6, %v161_v29  ;;  %v207_v12 = vmul.f32 %v861_v60, %v202_v47 }
  0x63   :  { %v895_v41 = vpop.eup %524  ;;  %v307_v44 = vadd.f32 1.0, %v523_v16  ;;  %v228_v17 = vadd.f32 %v225_v8, %v212_v10  ;;  %v155_v10 = vadd.f32 %v153_v0, %v139_v13  ;;  %v176_v8 = vadd.f32 %v173_v1, %v160_v26 }
  0x64   :  { %v899_v45 = vpop.eup %526  ;;  %v340_v50 = vadd.f32 1.0, %v895_v41  ;;  %v229_v18 = vadd.f32 %v227_v57, %v213_v11  ;;  %vm336_vm12 = vcmp.ge.f32.partialorder %v802_v14, 0.0  ;;  %vm337_vm13 = vcmp.ge.f32.partialorder %v809_v19, 0.0 }
  0x65   :  { %v529_v53 = vpop.eup %528  ;;  %540 = vlog2.f32 %v307_v44  ;;  %v341_v3 = vadd.f32 1.0, %v899_v45  ;;  %v234_v56 = vsub.f32 %v772_v30, %v228_v17  ;;  %v348_v13 = vmax.f32 %v821_v27, 0.0 }
  0x66   :  { %v531_v63 = vpop.eup %530  ;;  %542 = vrcp.f32 %v340_v50  ;;  %v230_v50 = vsub.f32 0.0, %v228_v17  ;;  %v209_v25 = vmul.f32 %v529_v53, %v203_v32  ;;  %v231_v22 = vsub.f32 0.0, %v229_v18 }
  0x67   :  { %v533_v7 = vpop.eup %532  ;;  %v358_v55 = vadd.f32 1.0, %v531_v63  ;;  %544 = vrcp.f32 %v341_v3  ;;  %v235_v9 = vsub.f32 %v777_v33, %v229_v18  ;;  %v158_v26 = vsub.f32 %v154_v52, %v864_v21 }
  0x68   :  { %v535_v28 = vpop.eup %534  ;;  %v359_v51 = vadd.f32 1.0, %v533_v7  ;;  %v159_v29 = vsub.f32 %v155_v10, %v867_v23  ;;  %v180_v60 = vsub.f32 %v176_v8, %v874_v38  ;;  %v181_v57 = vsub.f32 %v177_v20, %v877_v39 }
  0x69   :  { %v537_v58 = vpop.eup %536  ;;  %546 = vlog2.f32 %v358_v55  ;;  %v287_v24 = vmul.f32 0.6931472, %v535_v28  ;;  %v236_v63 = vmax.f32 %v234_v56, -5.2983174  ;;  %v232_v1 = vmax.f32 %v230_v50, -5.2983174 }
  0x6a   :  { %v539_v16 = vpop.eup %538  ;;  %548 = vlog2.f32 %v359_v51  ;;  %v289_v36 = vmul.f32 0.6931472, %v537_v58  ;;  %v240_v53 = vsub.f32 1.0, %v207_v12  ;;  %v349_v33 = vmax.f32 %v825_v31, 0.0 }
  0x6b   :  { %v309_v44 = vmul.f32 0.6931472, %v539_v16  ;;  %v290_v30 = vadd.f32 %v287_v24, %v274_v42  ;;  %v233_v6 = vmax.f32 %v231_v22, -5.2983174  ;;  %v237_v17 = vmax.f32 %v235_v9, -5.2983174 }
  0x6c   :  { %v291_v0 = vadd.f32 %v289_v36, %v275_v43  ;;  %v241_v21 = vsub.f32 1.0, %v209_v25  ;;  %v338_v23 = vsel %vm336_vm12, 1.0, %v895_v41  ;;  %v339_v43 = vsel %vm337_vm13, 1.0, %v899_v45 }
  0x6d   :  { %v312_v11 = vadd.f32 %v309_v44, %v296_v49  ;;  %v294_v38 = vsub.f32 %v290_v30, %v902_v46  ;;  %v182_v28 = vsub.f32 %v180_v60, %v158_v26  ;;  %v183_v47 = vsub.f32 %v181_v57, %v159_v29 }
  0x6e   :  { %v238_v51 = vmul.f32 %v236_v63, %v207_v12  ;;  %v295_v58 = vsub.f32 %v291_v0, %v905_v48  ;;  %v242_v32 = vmul.f32 %v240_v53, %v232_v1  ;;  %v239_v46 = vmul.f32 %v237_v17, %v209_v25 }
  0x6f   :  { %v541_v54 = vpop.eup %540  ;;  %v316_v39 = vsub.f32 %v312_v11, %v913_v2  ;;  %vm322_vm14 = vcmp.gt.f32.partialorder %v779_v34, 0.0  ;;  %vm323_vm15 = vcmp.gt.f32.partialorder %v781_v35, 0.0  ;;  %v184_v45 = vmax.f32 %v182_v28, 0.0 }
  0x70   :  { %v311_v3 = vmul.f32 0.6931472, %v541_v54  ;;  %v543_v7 = vpop.eup %542  ;;  %v185_v8 = vmax.f32 %v183_v47, 0.0  ;;  %v244_v20 = vadd.f32 %v242_v32, %v238_v51  ;;  %v324_v9 = vsel %vm322_vm14, %v847_v59, %v853_v4 }
  0x71   :  { %v545_v42 = vpop.eup %544  ;;  %v343_v41 = vmul.f32 %v543_v7, %v338_v23  ;;  %v318_v10 = vsub.f32 %v316_v39, %v294_v38  ;;  %vm420_vm0 = vcmask 0  }
  0x72   :  { %v313_v49 = vadd.f32 %v311_v3, %v297_v62  ;;  %v243_v62 = vmul.f32 %v241_v21, %v233_v6  ;;  %v345_v16 = vmul.f32 %v545_v42, %v339_v43  ;;  %v246_v54 = vsub.f32 0.0, %v244_v20 }
  0x73   :  { %v547_v55 = vpop.eup %546  ;;  %v376_v36 = vsub.f32 1.0, %v343_v41  ;;  %v320_v22 = vmax.f32 %v318_v10, 0.0  ;;  %v249_v0 = vmul.f32 %v889_v15, %v185_v8 }
  0x74   :  { %v549_v52 = vpop.eup %548  ;;  %v317_v14 = vsub.f32 %v313_v49, %v920_v37  ;;  %v361_v18 = vmul.f32 0.6931472, %v547_v55  ;;  %v245_v44 = vadd.f32 %v243_v62, %v239_v46  ;;  %v377_v25 = vsub.f32 1.0, %v345_v16 }
  0x75   :  { %v363_v2 = vmul.f32 0.6931472, %v549_v52  ;;  %v384_v1 = vmul.f32 %v324_v9, %v320_v22 }
  0x76   :  { %v364_v19 = vadd.f32 %v361_v18, %v348_v13  ;;  %v319_v24 = vsub.f32 %v317_v14, %v295_v58  ;;  %v247_v63 = vsub.f32 0.0, %v245_v44 }
  0x77   :  { %v365_v48 = vadd.f32 %v363_v2, %v349_v33 }
  0x78   :  { %v366_v56 = vsub.f32 0.0, %v364_v19  ;;  %v370_v37 = vsub.f32 %v821_v27, %v364_v19  ;;  %v321_v29 = vmax.f32 %v319_v24, 0.0  ;;  %v325_v27 = vsel %vm323_vm15, %v849_v61, %v855_v5 }
  0x79   :  { %v367_v12 = vsub.f32 0.0, %v365_v48  ;;  %v371_v50 = vsub.f32 %v825_v31, %v365_v48  ;;  %v248_v31 = vmul.f32 %v883_v40, %v184_v45  ;;  %v251_v35 = vmul.f32 %v249_v0, %v247_v63 }
  0x7a   :  { %v368_v13 = vmax.f32 %v366_v56, -5.2983174  ;;  %v372_v26 = vmax.f32 %v370_v37, -5.2983174  ;;  %v385_v3 = vmul.f32 %v325_v27, %v321_v29 }
  0x7b   :  { %v369_v30 = vmax.f32 %v367_v12, -5.2983174  ;;  %v373_v11 = vmax.f32 %v371_v50, -5.2983174  ;;  %v250_v33 = vmul.f32 %v248_v31, %v246_v54  ;;  %v390_v40 = vadd.f32 %v384_v1, %v248_v31 }
  0x7c   :  { %v374_v60 = vmul.f32 %v372_v26, %v343_v41  ;;  %v378_v57 = vmul.f32 %v376_v36, %v368_v13  ;;  %v391_v23 = vadd.f32 %v385_v3, %v249_v0 }
  0x7d   :  { %v375_v34 = vmul.f32 %v373_v11, %v345_v16  ;;  %v379_v59 = vmul.f32 %v377_v25, %v369_v30 }
  0x7e   :  { %v380_v4 = vadd.f32 %v378_v57, %v374_v60  ;;  %v424_v38 = vadd.f32 %v391_v23, %v390_v40 }
  0x7f   :  { %v381_v53 = vadd.f32 %v379_v59, %v375_v34 }
  0x80   :  { %v382_v7 = vsub.f32 0.0, %v380_v4 }
  0x81   :  { %v383_v61 = vsub.f32 0.0, %v381_v53 }
  0x82   :  { %v386_v5 = vmul.f32 %v384_v1, %v382_v7 }
  0x83   :  { %v387_v6 = vmul.f32 %v385_v3, %v383_v61 }
  0x84   :  { %v388_v17 = vadd.f32 %v386_v5, %v250_v33 }
  0x85   :  { %v389_v21 = vadd.f32 %v387_v6, %v251_v35 }
  0x87   :  { %v409_v42 = vadd.f32 %v389_v21, %v388_v17 }
  0x89   :  { %410 = vadd.xlane.f32.xlu0 %v409_v42 }
  0x8d   :  { %425 = vadd.xlane.f32.xlu0 %v424_v38 }
 0x116   :  { %v411_v15 = vpop.xlane.xlu0 %410 }
 0x117   :  { %v412_v49 = vrot.slane %v411_v15, 4 }
 0x119   :  { %v413_v39 = vadd.f32 %v412_v49, %v411_v15 }
 0x11a   :  { %v426_v43 = vpop.xlane.xlu0 %425 }
 0x11b   :  { %v414_v55 = vrot.slane %v413_v39, 2  ;;  %v427_v28 = vrot.slane %v426_v43, 4 }
 0x11d   :  { %v428_v47 = vadd.f32 %v427_v28, %v426_v43  ;;  %v415_v51 = vadd.f32 %v414_v55, %v413_v39 }
 0x11f   :  { %v429_v58 = vrot.slane %v428_v47, 2  ;;  %v416_v52 = vrot.slane %v415_v51, 1 }
 0x121   :  { %v430_v32 = vadd.f32 %v429_v58, %v428_v47  ;;  %v417_v14 = vadd.f32 %v416_v52, %v415_v51 }
 0x123   :  { %474 = vpush %v417_v14  ;;  %v431_v41 = vrot.slane %v430_v32, 1 }
 0x125   :  { %v432_v18 = vadd.f32 %v431_v41, %v430_v32 }
 0x127   :  { %476 = vpush %v432_v18 }
 0x154   :  { %s475_s26 = spop %474 }
 0x155   :  { %v419_v46 = vstv %s475_s26 }
 0x156   :  { %421 = vst.msk [vmem:[#allocation10] sm:$0x1] %vm420_vm0, %v419_v46 }
 0x157   :  { %627 = shalt.err (!%p624_p0)
}
 0x158   :  { %s628_s7 = scalar_lea.hbm %s991_s3, 16 }
 0x159   :  { %p629_p1 = scmp.ne.s32.totalorder %s991_s3, %s628_s7  ;;  %p632_p2 = scmp.lt.u32.totalorder %s628_s7, %s991_s3 }
 0x15b   :  { %p634_p3 = pnand %p632_p2, %p629_p1 }
 0x15d   :  { %637 = shalt.err (!%p634_p3)
}
 0x15e   :  { %445 = dma.vmem_to_hbm [thread:$0]  %s443_s25, 16, %s991_s3, [#allocation6]  }
 0x15f   :  { %s477_s13 = spop %476  ;;  %s638_s14 = scalar_lea.vmem %s453_s28, 16 }
 0x160   :  { %v434_v62 = vstv %s477_s13  ;;  %p639_p4 = scmp.ne.s32.totalorder %s453_s28, %s638_s14  ;;  %s642_s15 = scalar_lea.vmem %s453_s28, 32 }
 0x161   :  { %435 = vst.msk [vmem:[#allocation11] sm:$0x1] %vm420_vm0, %v434_v62  ;;  %p643_p5 = scmp.lt.s32.totalorder %s453_s28, %s453_s28  ;;  %p644_p6 = scmp.lt.s32.totalorder %s642_s15, %s638_s14 }
 0x163   :  { %p645_p7 = por %p644_p6, %p643_p5 }
 0x165   :  { %p646_p8 = pnand %p645_p7, %p639_p4 }
 0x167   :  { %649 = shalt.err (!%p646_p8)
}
 0x168   :  { %s650_s19 = scalar_lea.hbm %s992_s4, 16 }
 0x169   :  { %p651_p9 = scmp.ne.s32.totalorder %s992_s4, %s650_s19  ;;  %p654_p10 = scmp.lt.u32.totalorder %s650_s19, %s992_s4 }
 0x16b   :  { %p656_p11 = pnand %p654_p10, %p651_p9 }
 0x16d   :  { %659 = shalt.err (!%p656_p11)
}
 0x16e   :  { %455 = dma.vmem_to_hbm [thread:$0]  %s453_s28, 16, %s992_s4, [#allocation12]  }
 0x16f   :  { %664 = dma.done.wait [#allocation6], 16  }
 0x170   :  { %665 = vsyncadd [#allocation6], 4294967280 }
 0x171   :  { %666 = dma.done.wait [#allocation12], 16  }
 0x172   :  { %667 = vsyncadd [#allocation12], 4294967280 }
 0x173   :  { %462 = vsyncpa [#allocation5], 1 }
 0x174   :  { %463 = vsyncpa [#allocation8], 1 }
 0x175   :  { %464 = vsyncpa [#allocation6], 1 }
 0x176   :  { %465 = vsyncpa [#allocation12], 1 }

</bundles_post_ra>
